<compile_context>
chip_gen: v5e
topology: v5e:2x2
jax: 0.10.0
libtpu: 0.0.40
codegen_flags: <defaults>
</compile_context>

<pallas_src>
import functools

import jax
import jax.numpy as jnp
from jax.experimental import pallas as pl
from jax.experimental.pallas import tpu as pltpu


def _se_kernel(x_ref, w1t_ref, w2t_ref, o_ref, *, inv_hw):
    # x_ref:   (TB, C, HW)  batch tile, full channel and spatial extent
    # w1t_ref: (C, Cr)      fc[0].weight.T  (grid-resident)
    # w2t_ref: (Cr, C)      fc[2].weight.T  (grid-resident)
    # o_ref:   (TB, C, HW)
    x = x_ref[...]                                               # native dtype

    # AdaptiveAvgPool2d(1): f32 accumulation over the spatial (lane) axis.
    pooled = jnp.sum(x, axis=-1, dtype=jnp.float32) * inv_hw     # (TB, C) f32

    # fc[0]: Linear(C, Cr, bias=False) + ReLU   (MXU, f32 accumulate).
    h = jnp.maximum(
        jnp.dot(pooled, w1t_ref[...], preferred_element_type=jnp.float32), 0.0)

    # fc[2]: Linear(Cr, C, bias=False) + HSigmoid = relu6(z + 3) / 6.
    z = jnp.dot(h, w2t_ref[...], preferred_element_type=jnp.float32)
    s = jnp.clip(z + 3.0, 0.0, 6.0) * (1.0 / 6.0)                # (TB, C) f32

    # Broadcast scale over the spatial axis in the input's native dtype.
    o_ref[...] = (x * s.astype(x.dtype)[..., None]).astype(o_ref.dtype)


def _tpu_vmem_and_cores():
    """Return (per-core VMEM bytes, assumed TensorCores per chip)."""
    vmem_cap = 64 * 1024 * 1024          # conservative fallback (v7x per-TC VMEM)
    try:
        vmem_cap = int(pltpu.get_tpu_info().vmem_capacity_bytes)
    except Exception:
        pass
    # v7x: 64 MiB VMEM per TensorCore and 2 TensorCores/chip; v5e/v6e: 128 MiB, 1 TC.
    num_cores = 2 if vmem_cap <= 64 * 1024 * 1024 else 1
    return vmem_cap, num_cores


def se_module(x, w1t, w2t, *, target_block_bytes=None):
    """Squeeze-and-excite forward.

    x:   (B, C, H, W) NCHW.
    w1t: (C, Cr)  = fc[0].weight.T  (pre-transposed, hoisted out of the call).
    w2t: (Cr, C)  = fc[2].weight.T.
    Returns (B, C, H, W), same dtype as x.
    """
    B, C, H, W = x.shape
    HW = H * W
    Cr = w1t.shape[1]
    assert w1t.shape == (C, Cr) and w2t.shape == (Cr, C)

    vmem_cap, num_cores = _tpu_vmem_and_cores()
    if target_block_bytes is None:
        # ~8 MiB blocks on 128 MiB-VMEM chips (v5e/v6e), ~4 MiB on v7x (64 MiB).
        target_block_bytes = (4 * 1024 * 1024 if num_cores == 2
                              else 8 * 1024 * 1024)

    # (B, C, H, W) -> (B, C, HW): metadata-only view, no HBM copy, no padding.
    xf = x.reshape(B, C, HW)

    itemsize = jnp.dtype(x.dtype).itemsize
    per_batch_bytes = C * HW * itemsize

    # Batch tile taken only from divisors of B -> wrapper stays copy-free.
    divisors = [d for d in range(1, B + 1) if B % d == 0]
    fitting = [d for d in divisors
               if d * per_batch_bytes <= target_block_bytes] or [1]
    if num_cores == 2 and B >= 2:
        # Prefer an even step count so the "parallel" batch axis splits evenly
        # across the two TensorCores (no ceil(n/2) straggler).
        even = [d for d in fitting if (B // d) % 2 == 0]
        TB = max(even) if even else max(fitting)
    else:
        TB = max(fitting)
    n_steps = B // TB
    # TODO(synk): add HW tiling (two-pass pool + scale) if a single image ever
    # exceeds ~1/4 of VMEM; typical MobileNetV3 SE shapes never do.

    block_bytes = TB * per_batch_bytes
    weight_bytes = (w1t.size * jnp.dtype(w1t.dtype).itemsize
                    + w2t.size * jnp.dtype(w2t.dtype).itemsize)
    # Double-buffered in + out blocks + resident weights, 2x slack, capped per
    # generation (roomy on 128 MiB chips, conservative on v7x's 64 MiB per TC).
    vmem_needed = 2 * 2 * block_bytes + 2 * weight_bytes
    gen_cap = 40 * 1024 * 1024 if num_cores == 2 else 80 * 1024 * 1024
    vmem_limit = int(min(max(2 * vmem_needed, 16 * 1024 * 1024), gen_cap))

    # Advisory cost hint: one read + one write of x, two tiny matmuls, no EUP.
    cost = pl.CostEstimate(
        flops=int(4 * B * C * Cr + 2 * B * C * HW),
        transcendentals=0,
        bytes_accessed=int(2 * B * C * HW * itemsize + weight_bytes),
    )

    kernel = functools.partial(_se_kernel, inv_hw=1.0 / HW)
    out = pl.pallas_call(
        kernel,
        out_shape=jax.ShapeDtypeStruct((B, C, HW), x.dtype),
        grid=(n_steps,),
        in_specs=[
            pl.BlockSpec((TB, C, HW), lambda b: (b, 0, 0)),
            # Constant index_map -> weights DMA'd once, resident across the grid.
            pl.BlockSpec((C, Cr), lambda b: (0, 0)),
            pl.BlockSpec((Cr, C), lambda b: (0, 0)),
        ],
        out_specs=pl.BlockSpec((TB, C, HW), lambda b: (b, 0, 0)),
        compiler_params=pltpu.CompilerParams(
            dimension_semantics=("parallel",),
            vmem_limit_bytes=vmem_limit),
        cost_estimate=cost,
    )(xf, w1t, w2t)

    return out.reshape(B, C, H, W)


def se_module_ref(x, w1, w2):
    """Pure-JAX reference matching the PyTorch forward exactly."""
    y = jnp.mean(x, axis=(2, 3))                 # avg_pool(1).view(b, c)
    y = jnp.maximum(y @ w1.T, 0.0)               # Linear + ReLU
    y = y @ w2.T                                 # Linear
    y = jnp.clip(y + 3.0, 0.0, 6.0) / 6.0        # HSigmoid
    return x * y[:, :, None, None]


if __name__ == "__main__":
    # Module config consistent with SEModule(inp=4, reduction=4).
    B, C, H, W = 2, 4, 16, 16
    reduction = 4
    Cr = max(C // reduction, 1)

    key = jax.random.PRNGKey(0)
    kx, k1, k2 = jax.random.split(key, 3)
    x = jax.random.normal(kx, (B, C, H, W), dtype=jnp.float32)
    # Deterministic synthetic weights (nn.Linear layouts: (out_features, in_features)).
    w1 = jax.random.normal(k1, (Cr, C), dtype=jnp.float32) * 0.5   # fc[0].weight
    w2 = jax.random.normal(k2, (C, Cr), dtype=jnp.float32) * 0.5   # fc[2].weight

    # Weight transposes hoisted out of the per-call wrapper (done once here).
    w1t = jnp.asarray(w1).T   # (C, Cr)
    w2t = jnp.asarray(w2).T   # (Cr, C)

    out = se_module(x, w1t, w2t)
    out = jax.block_until_ready(out)

    ref = se_module_ref(x, w1, w2)
    assert out.shape == (B, C, H, W)
    assert jnp.allclose(out, ref, atol=1e-5, rtol=1e-5), "mismatch vs reference"

    print("KERNEL_OK")
</pallas_src>

<mosaic_0001>
module attributes {stable_mosaic.version = 11 : i64} {
  func.func @_se_kernel(%arg0: i32, %arg1: memref<1x4x256xf32, #tpu.memory_space<vmem>>, %arg2: memref<4x1xf32, #tpu.memory_space<vmem>>, %arg3: memref<1x4xf32, #tpu.memory_space<vmem>>, %arg4: memref<1x4x256xf32, #tpu.memory_space<vmem>>) attributes {dimension_semantics = [#tpu.dimension_semantics<parallel>], iteration_bounds = array<i64: 2>, scalar_prefetch = 0 : i64, scratch_operands = 0 : i64, tpu.core_type = #tpu.core_type<tc>, window_params = [{transform_indices = @transform_0, window_bounds = array<i64: 1, 4, 256>}, {pipeline_mode = #tpu.pipeline_mode<synchronous>, transform_indices = @transform_1, window_bounds = array<i64: 4, 1>}, {pipeline_mode = #tpu.pipeline_mode<synchronous>, transform_indices = @transform_2, window_bounds = array<i64: 1, 4>}, {transform_indices = @transform_3, window_bounds = array<i64: 1, 4, 256>}]} {
    %c0 = arith.constant 0 : index
    %c0_0 = arith.constant 0 : index
    %c0_1 = arith.constant 0 : index
    %0 = vector.load %arg1[%c0, %c0_0, %c0_1] : memref<1x4x256xf32, #tpu.memory_space<vmem>>, vector<1x4x256xf32>
    %cst = arith.constant dense<0.000000e+00> : vector<1x4xf32>
    %1 = vector.multi_reduction <add>, %0, %cst [2] : vector<1x4x256xf32> to vector<1x4xf32>
    %cst_2 = arith.constant 3.906250e-03 : f32
    %2 = vector.broadcast %cst_2 : f32 to vector<1x4xf32>
    %3 = arith.mulf %1, %2 : vector<1x4xf32>
    %c0_3 = arith.constant 0 : index
    %c0_4 = arith.constant 0 : index
    %4 = vector.load %arg2[%c0_3, %c0_4] : memref<4x1xf32, #tpu.memory_space<vmem>>, vector<4x1xf32>
    %cst_5 = arith.constant dense<0.000000e+00> : vector<1x1xf32>
    %5 = tpu.matmul %3, %4, %cst_5 {dimension_numbers = #tpu.dot_dimension_numbers<[1], [0], [0], [1], [0, 0, 1, 1], [], []>} : vector<1x4xf32>, vector<4x1xf32>, vector<1x1xf32> -> vector<1x1xf32>
    %cst_6 = arith.constant 0.000000e+00 : f32
    %6 = vector.broadcast %cst_6 : f32 to vector<1x1xf32>
    %7 = arith.maximumf %5, %6 : vector<1x1xf32>
    %c0_7 = arith.constant 0 : index
    %c0_8 = arith.constant 0 : index
    %8 = vector.load %arg3[%c0_7, %c0_8] : memref<1x4xf32, #tpu.memory_space<vmem>>, vector<1x4xf32>
    %cst_9 = arith.constant dense<0.000000e+00> : vector<1x4xf32>
    %9 = tpu.matmul %7, %8, %cst_9 {dimension_numbers = #tpu.dot_dimension_numbers<[1], [0], [0], [1], [0, 0, 1, 1], [], []>} : vector<1x1xf32>, vector<1x4xf32>, vector<1x4xf32> -> vector<1x4xf32>
    %cst_10 = arith.constant 3.000000e+00 : f32
    %10 = vector.broadcast %cst_10 : f32 to vector<1x4xf32>
    %11 = arith.addf %9, %10 : vector<1x4xf32>
    %cst_11 = arith.constant 0.000000e+00 : f32
    %cst_12 = arith.constant 6.000000e+00 : f32
    %12 = vector.broadcast %cst_11 : f32 to vector<1x4xf32>
    %13 = arith.maximumf %12, %11 : vector<1x4xf32>
    %14 = vector.broadcast %cst_12 : f32 to vector<1x4xf32>
    %15 = arith.minimumf %14, %13 : vector<1x4xf32>
    %cst_13 = arith.constant 0.166666672 : f32
    %16 = vector.broadcast %cst_13 : f32 to vector<1x4xf32>
    %17 = arith.mulf %15, %16 : vector<1x4xf32>
    %18 = vector.shape_cast %17 : vector<1x4xf32> to vector<1x4x1xf32>
    %19 = vector.broadcast %18 : vector<1x4x1xf32> to vector<1x4x256xf32>
    %20 = arith.mulf %0, %19 : vector<1x4x256xf32>
    %c0_14 = arith.constant 0 : index
    %c0_15 = arith.constant 0 : index
    %c0_16 = arith.constant 0 : index
    %21 = vector.load %arg4[%c0_14, %c0_15, %c0_16] : memref<1x4x256xf32, #tpu.memory_space<vmem>>, vector<1x4x256xf32>
    tpu.vector_store %arg4[%c0_14, %c0_15, %c0_16], %20 {strides = array<i32>} : memref<1x4x256xf32, #tpu.memory_space<vmem>>, vector<1x4x256xf32>,
    return
  }
  func.func @transform_0(%arg0: i32) -> (i32, i32, i32) {
    %c0_i32 = arith.constant 0 : i32
    %c0_i32_0 = arith.constant 0 : i32
    %c0_i32_1 = arith.constant 0 : i32
    return %arg0, %c0_i32, %c0_i32_0 : i32, i32, i32
  }
  func.func @transform_1(%arg0: i32) -> (i32, i32) {
    %c0_i32 = arith.constant 0 : i32
    %c0_i32_0 = arith.constant 0 : i32
    %c0_i32_1 = arith.constant 0 : i32
    return %c0_i32, %c0_i32_0 : i32, i32
  }
  func.func @transform_2(%arg0: i32) -> (i32, i32) {
    %c0_i32 = arith.constant 0 : i32
    %c0_i32_0 = arith.constant 0 : i32
    %c0_i32_1 = arith.constant 0 : i32
    return %c0_i32, %c0_i32_0 : i32, i32
  }
  func.func @transform_3(%arg0: i32) -> (i32, i32, i32) {
    %c0_i32 = arith.constant 0 : i32
    %c0_i32_0 = arith.constant 0 : i32
    %c0_i32_1 = arith.constant 0 : i32
    return %arg0, %c0_i32, %c0_i32_0 : i32, i32, i32
  }
}

</mosaic_0001>

<bundles_post_ra>
// kernel: tpu_custom_call.1
= control target key start
LH: loop header
LB: loop body
LE: loop exit
PB: predicated region body
PF: predicated region fallthrough
CT: control target
= control target key end

     0   :  { %8 = vsyncpa [#allocation3], 0  ;;  %s693_s0 = inlined_call_operand.hbm [shape: f32[2,4,256], index: 0, kind: input, shape index: {}]   ;;  %s694_s1 = inlined_call_operand.vmem [shape: f32[4,1], index: 1, kind: input, shape index: {}]   ;;  %s695_s2 = inlined_call_operand.vmem [shape: f32[1,4], index: 2, kind: input, shape index: {}]   ;;  %s696_s3 = inlined_call_operand.hbm [shape: f32[2,4,256], index: 3, kind: output, shape index: {}]  }
   0x1   :  { %10 = vsyncpa [#allocation3 + $0x1], 0 }
   0x2   :  { %11 = vsyncpa [#allocation4], 0 }
   0x3   :  { %13 = vsyncpa [#allocation4 + $0x1], 0  ;;  %s556_s12 = smov 0   ;;  %s558_s13 = smov 0  }
   0x4   :  { %s560_s14 = smov 0   ;;  %s562_s15 = smov 0  }
   0x5 LB: > { %s577_s16 = sadd.s32 4294967295, %s533_s15   ;;  %s369_s17 = sadd.s32 4294967294, %s533_s15   ;;  %s533_s15 = sphi %s562_s15, %s706_s15   ;;  %s529_s14 = sphi %s560_s14, %s705_s14   ;;  %s525_s13 = sphi %s558_s13, %s704_s13   ;;  %s521_s12 = sphi %s556_s12, %s703_s12  }
   0x6   : > { %s581_s18 = sadd.s32 1, %s533_s15   ;;  %s26_s19 = sadd.s32 1, %s529_s14 }
   0x7   : > { %s23_s20 = ssub.s32 %s533_s15, %s581_s18  ;;  %p33_p0 = scmp.ne.s32.totalorder %s529_s14, %s525_s13 }
   0x8   : > { %p24_p1 = scmp.eq.s32.totalorder %s23_s20, 0  ;;  %p34_p2 = scmp.eq.s32.totalorder %s533_s15, 0 }
   0x9   : > { %p39_p3 = scmp.ne.s32.totalorder %s525_s13, %s521_s12  ;;  %p40_p4 = scmp.eq.s32.totalorder %s577_s16, 0 }
   0xa   : > { %s593_s21 = scalar_select %p24_p1, %s529_s14, %s26_s19  }
   0xb   : > { %p595_p5 = por %p34_p2, %p33_p0  ;;  %p599_p6 = por %p40_p4, %p39_p3 }
   0xc   : > { %p105_p7 = scmp.eq.s32.totalorder %s577_s16, 1  ;;  %p111_p8 = scmp.eq.s32.totalorder %s369_s17, 1 }
   0xd   : > { %p401_p10 = scmp.lt.s32.totalorder %s533_s15, 2  ;;  %s137_s26 = sand.u32 1, %s529_s14  }
   0xe   : > { %p606_p11 = por %p105_p7, %p33_p0  ;;  %p610_p12 = por %p111_p8, %p39_p3 }
   0xf   : > { %s387_s27 = sshll.u32 %s533_s15, 3  ;;  %s372_s28 = sshll.u32 %s137_s26, 3 }
  0x10   : > { %s146_s4 = scalar_lea.hbm %s693_s0, %s387_s27  ;;  %s141_s6 = scalar_lea.vmem [#allocation2], %s372_s28 }
  0x11   : > { %s148_s5 = sshll.u32 %s146_s4, 4  ;;  %s150_s7 = sshll.u32 %s141_s6, 4  ;;  %s149_s5 = int_to_ptr.hbm [resolvable:$true] %s148_s5  ;;  %s151_s7 = int_to_ptr.vmem [resolvable:$true] %s150_s7 }
  0x12   : > { %p621_p13 = pnand %p401_p10, %p595_p5  ;;  %p375_p0 = scmp.ge.s32.totalorder %s533_s15, 1 }
  0x13   : > { %p155_p1 = scmp.lt.s32.totalorder %s533_s15, 3  ;;  %s138_s9 = scalar_lea.sflag [#allocation3], %s137_s26 }
  0x14   : > { %s437_s10 = sshra.s32 %s149_s5, 4  ;;  %p441_p3 = pneg %p621_p13  ;;  %s438_s10 = int_to_ptr.hbm [resolvable:$true] %s437_s10 }
  0x15   : > { %s439_s11 = scalar_lea.hbm %s438_s10, 8  ;;  %s444_s20 = scalar_lea.hbm %s693_s0, 16 }
  0x16   : > { %p440_p2 = scmp.ne.s32.totalorder %s438_s10, %s439_s11  ;;  %p445_p5 = scmp.lt.s32.totalorder %s438_s10, %s693_s0 }
  0x17   : > { %p446_p8 = scmp.lt.s32.totalorder %s444_s20, %s439_s11 }
  0x18   : > { %p442_p4 = pnand %p441_p3, %p440_p2 }
  0x19   : > { %p447_p10 = por %p446_p8, %p445_p5 }
  0x1a   : > { %p443_p7 = pneg %p442_p4 }
  0x1c   : > { %p448_p9 = pnand %p447_p10, %p443_p7 }
  0x1e   : > { %451 = shalt.err (!%p448_p9)
}
  0x1f   : > { %396 = dma.hbm_to_vmem [thread:$0]  (!%p621_p13), %s149_s5, 128, %s151_s7, %s138_s9  }
  0x20   : > { %p156_p2 = pnand %p375_p0, %p155_p1 }
  0x21   : > { %s642_s26 = sand.u32 (!%p156_p2), 1, %s525_s13  }
  0x22   : > { %159 = sbr.rel (%p156_p2) target bundleno = 558 (0x22e), region = 32  ;;  %s376_s28 = sshll.u32 (!%p156_p2), %s642_s26, 3 }
  0x23   : > { %s162_s29 = scalar_lea.sflag (!%p156_p2), [#allocation3], %s642_s26  ;;  %s165_s30 = scalar_lea.vmem (!%p156_p2), [#allocation2], %s376_s28 }
  0x27   : > { %512 = dma.done.wait (%p599_p6), %s162_s29, 128  }
  0x28   : > { %514 = vsyncadd (%p599_p6), %s162_s29, 4294967168  ;;  %v189_v0 = vld [vmem:[%s165_s30] sm:$0xff]  ;;  %vm196_vm0 = vcmask 1043456   ;;  %v203_v6 = vld [vmem:[%s694_s1] sm:$0xf]  ;;  %v205_v7 = vlaneseq  ;;  %vm208_vm1 = vcmask 31744  }
  0x29   : > { %191 = vst [vmem:[#allocation1] ss:$2 sm:$0xff] %v189_v0  ;;  %378 = vmatpush.msk.msra.mxu0 %vm196_vm0, %v203_v6  ;;  %v235_v12 = vld [vmem:[%s695_s2] sm:$0x1]  ;;  %vm240_vm2 = vcmask 1040384   ;;  %vm236_vm3 = vcmask 7168  }
  0x2a   : > { %v206_v8 = vand.u32 127, %v205_v7  ;;  %380 = vmatpush.msk.msra.mxu1 %vm240_vm2, %v235_v12  ;;  %v269_v15 = vshrl.u32 %v205_v7, 7  ;;  %v535_v22 = vmov 839922192   ;;  %s388_s7 = sshll.u32 %s577_s16, 3  ;;  %s188_s11 = scalar_lea.vmem [#allocation5], %s376_s28 }
  0x2b   : > { %v276_v23 = vunpack.c.l.s4 %v535_v22  ;;  %s294_s10 = scalar_lea.hbm %s696_s3, %s388_s7  ;;  %s296_s17 = sshll.u32 %s188_s11, 4  ;;  %s297_s17 = int_to_ptr.vmem [resolvable:$true] %s296_s17 }
  0x2c   : > { %436 = vset.pattern.permute.xlu0 %v269_v15  ;;  %s298_s19 = sshll.u32 %s294_s10, 4  ;;  %s283_s20 = scalar_lea.sflag [#allocation4], %s642_s26  ;;  %s299_s19 = int_to_ptr.hbm [resolvable:$true] %s298_s19 }
  0x2d   : > { %v277_v24 = vunpack.c.0.s8 %v276_v23  ;;  %s481_s22 = sshra.s32 %s299_s19, 4  ;;  %s487_s30 = scalar_lea.hbm %s696_s3, 16  ;;  %s482_s22 = int_to_ptr.hbm [resolvable:$true] %s481_s22 }
  0x2e   : > { %s483_s16 = scalar_lea.hbm %s482_s22, 8  ;;  %p488_p0 = scmp.lt.s32.totalorder %s482_s22, %s696_s3 }
  0x2f   : > { %p484_p6 = scmp.ne.s32.totalorder %s482_s22, %s483_s16  ;;  %p489_p1 = scmp.lt.s32.totalorder %s487_s30, %s483_s16 }
  0x30   : > { %v192_v1 = vld.sshfl [vmem:[#allocation1] sm:$0xff pattern:$0x75316420]  ;;  %v193_v2 = vld.sshfl [vmem:[#allocation1 + $0x8] sm:$0xff pattern:$0x75316420] }
  0x31   : > { %v197_v3 = vsel %vm196_vm0, %v192_v1, 0.0  ;;  %v198_v4 = vsel %vm196_vm0, %v193_v2, 0.0  ;;  %p485_p9 = pnand %p484_p6, %p606_p11  ;;  %p490_p3 = por %p489_p1, %p488_p0 }
  0x32   : > { %v199_v5 = vadd.f32 %v198_v4, %v197_v3 }
  0x33   : > { %p486_p13 = pneg %p485_p9 }
  0x34   : > { %200 = vadd.xlane.f32.xlu0 %v199_v5 }
  0x35   : > { %p491_p4 = pnand %p490_p3, %p486_p13 }
  0xa7   : > { %v201_v9 = vpop.xlane.xlu0 %200 }
  0xa8   : > { %v202_v10 = vmul.f32 0.00390625, %v201_v9 }
  0xaa   : > { %v207_v11 = vperm.slane %v202_v10, %v206_v8 }
  0xac   : > { %379 = vmatmul.msk.f32.vlgmr.msra.gmra.mxu0 %vm208_vm1, %v207_v11 }
 0x129   : > { %v231_v13 = vpop.f32.mrf.mxu0 }
 0x12a   : > { %v234_v14 = vmax.f32 %v231_v13, 0.0 }
 0x12c   : > { %381 = vmatmul.msk.f32.vlgmr.msra.gmra.mxu1 %vm236_vm3, %v234_v14 }
 0x1a9   : > { %v261_v16 = vpop.f32.mrf.mxu1 }
 0x1aa   : > { %v262_v17 = vadd.f32 3.0, %v261_v16 }
 0x1ac   : > { %v264_v18 = vmax.f32 %v262_v17, 0.0 }
 0x1ae   : > { %v265_v19 = vmin.f32 %v264_v18, 6.0 }
 0x1b0   : > { %v266_v20 = vmul.f32 0.16666667, %v265_v19 }
 0x1b2   : > { %v267_v21 = vperm.slane %v266_v20, 0 }
 0x1b4   : > { %272 = vperm.xlu0 %436, %v267_v21  }
 0x226   : > { %v273_v25 = vpop.permute.xlu0 %272 }
 0x227   : > { %v278_v26 = vperm.slane %v273_v25, %v277_v24 }
 0x229   : > { %v280_v27 = vmul.f32 %v278_v26, %v189_v0 }
 0x22b   : > { %281 = vst [vmem:[%s188_s11] sm:$0xff] %v280_v27 }
 0x22c   : > { %494 = shalt.err (!%p491_p4)
}
 0x22d   : > { %391 = dma.vmem_to_hbm [thread:$0]  (%p606_p11), %s297_s17, 128, %s299_s19, %s283_s20  }
 0x22e PF: > { %s310_s26 = sand.u32 1, %s521_s12   ;;  %p702_p7 = scmp.ge.s32.totalorder %s533_s15, 2 }
 0x22f   : > { %s311_s5 = scalar_lea.sflag [#allocation4], %s310_s26 }
 0x230   : > { %p398_p5 = pnand %p702_p7, %p610_p12 }
 0x232   : > { %p399_p8 = pneg %p398_p5 }
 0x234   : > { %516 = dma.done.wait (%p399_p8), %s311_s5, 128  }
 0x235   : > { %518 = vsyncadd (%p399_p8), %s311_s5, 4294967168  ;;  %p16_p10 = scmp.ge.s32.totalorder %s581_s18, 4   ;;  %s703_s12 = smov %s525_s13 }
 0x236   : > { %s704_s13 = smov %s529_s14  ;;  %s705_s14 = smov %s593_s21 }
 0x237   : > { %s706_s15 = smov %s581_s18  ;;  %18 = sbr.rel (!%p16_p10) target bundleno = 5 (0x5), region = 77 }
 0x23c   :  { %317 = vsyncpa [#allocation3], 1 }
 0x23d   :  { %319 = vsyncpa [#allocation3 + $0x1], 1 }
 0x23e   :  { %320 = vsyncpa [#allocation4], 1 }
 0x23f   :  { %322 = vsyncpa [#allocation4 + $0x1], 1 }

</bundles_post_ra>
